<compile_context>
chip_gen: v6e
topology: v6e:2x2x1
jax: 0.10.0
libtpu: 0.0.40
codegen_flags: <defaults>
</compile_context>

<pallas_src>
import functools

import jax
import jax.numpy as jnp
import numpy as np
from jax.experimental import pallas as pl
from jax.experimental.pallas import tpu as pltpu


def _round_up(x, m):
    return ((x + m - 1) // m) * m


# --------------------------------------------------------------------------- #
# Kernel: fused 3-layer MLP, entirely in VMEM.
# x:(B,F) w1:(F,H1) b1:(1,H1) w2:(H1,H2) b2:(1,H2) w3:(H2,Op) b3:(1,Op) -> o:(B,Op)
# --------------------------------------------------------------------------- #
def mlp_kernel(x_ref, w1_ref, b1_ref, w2_ref, b2_ref, w3_ref, b3_ref, o_ref):
    x = x_ref[...]
    h1 = jnp.dot(x, w1_ref[...], preferred_element_type=jnp.float32) + b1_ref[...]
    h1 = jnp.maximum(h1, 0.0)  # ReLU
    h2 = jnp.dot(h1, w2_ref[...], preferred_element_type=jnp.float32) + b2_ref[...]
    h2 = jnp.maximum(h2, 0.0)  # ReLU
    o_ref[...] = (
        jnp.dot(h2, w3_ref[...], preferred_element_type=jnp.float32) + b3_ref[...]
    )


# --------------------------------------------------------------------------- #
# One-time parameter preparation (hoisted out of the per-call path).
# Only the final output dim is padded (to a multiple of 128) so the kernel's
# output store is lane-dense; all other dims keep their natural sizes.
# --------------------------------------------------------------------------- #
def prepare_params(params):
    f_out = params["w3"].shape[1]
    op = _round_up(f_out, 128)
    h2 = params["w3"].shape[0]
    w3p = jnp.zeros((h2, op), jnp.float32).at[:, :f_out].set(params["w3"])
    b3p = jnp.zeros((1, op), jnp.float32).at[0, :f_out].set(params["b3"])
    prepared = {
        "w1": params["w1"].astype(jnp.float32),
        "b1": params["b1"].astype(jnp.float32).reshape(1, -1),
        "w2": params["w2"].astype(jnp.float32),
        "b2": params["b2"].astype(jnp.float32).reshape(1, -1),
        "w3": w3p,
        "b3": b3p,
    }
    return prepared, f_out


# --------------------------------------------------------------------------- #
# Forward.  Single-block path for small (inference) batches; 1-D parallel grid
# over the batch for training-size batches.
# --------------------------------------------------------------------------- #
@functools.partial(jax.jit, static_argnames=("num_outputs", "batch_block"))
def qdqn_classical_forward(state, prepared, *, num_outputs, batch_block=256):
    state = state.astype(jnp.float32)
    B, F_in = state.shape
    w1, b1 = prepared["w1"], prepared["b1"]
    w2, b2 = prepared["w2"], prepared["b2"]
    w3, b3 = prepared["w3"], prepared["b3"]
    Op = w3.shape[1]

    if B >= batch_block:
        # Training-size batch: tile the batch, keep weights resident.
        Bp = _round_up(B, batch_block)
        xg = state
        if Bp != B:
            xg = jnp.zeros((Bp, F_in), jnp.float32).at[:B].set(state)
        out = pl.pallas_call(
            mlp_kernel,
            out_shape=jax.ShapeDtypeStruct((Bp, Op), jnp.float32),
            grid=(Bp // batch_block,),
            in_specs=[
                pl.BlockSpec((batch_block, F_in), lambda i: (i, 0)),
                pl.BlockSpec(w1.shape, lambda i: (0, 0)),
                pl.BlockSpec(b1.shape, lambda i: (0, 0)),
                pl.BlockSpec(w2.shape, lambda i: (0, 0)),
                pl.BlockSpec(b2.shape, lambda i: (0, 0)),
                pl.BlockSpec(w3.shape, lambda i: (0, 0)),
                pl.BlockSpec(b3.shape, lambda i: (0, 0)),
            ],
            out_specs=pl.BlockSpec((batch_block, Op), lambda i: (i, 0)),
            compiler_params=pltpu.CompilerParams(
                dimension_semantics=("parallel",)
            ),
        )(xg, w1, b1, w2, b2, w3, b3)
        return out[:B, :num_outputs]

    # Small (inference) batch: one un-gridded block, everything in VMEM.
    vmem = pl.BlockSpec(memory_space=pltpu.MemorySpace.VMEM)
    out = pl.pallas_call(
        mlp_kernel,
        out_shape=jax.ShapeDtypeStruct((B, Op), jnp.float32),
        in_specs=[vmem] * 7,
        out_specs=vmem,
    )(state, w1, b1, w2, b2, w3, b3)
    return out[:, :num_outputs]


# --------------------------------------------------------------------------- #
# Init + pure-JAX reference.
# --------------------------------------------------------------------------- #
def init_params(key, num_inputs, layer_size, num_outputs):
    """Deterministic init matching nn.Linear default (U(-1/sqrt(fan_in), +))."""
    dims = [num_inputs] + list(layer_size) + [num_outputs]
    params = {}
    for i in range(3):
        fan_in, fan_out = dims[i], dims[i + 1]
        key, kw, kb = jax.random.split(key, 3)
        bound = 1.0 / np.sqrt(fan_in)
        params[f"w{i+1}"] = jax.random.uniform(
            kw, (fan_in, fan_out), jnp.float32, -bound, bound
        )
        params[f"b{i+1}"] = jax.random.uniform(
            kb, (fan_out,), jnp.float32, -bound, bound
        )
    return params


def reference_forward(state, p):
    h1 = jnp.maximum(state @ p["w1"] + p["b1"], 0.0)
    h2 = jnp.maximum(h1 @ p["w2"] + p["b2"], 0.0)
    return h2 @ p["w3"] + p["b3"]


if __name__ == "__main__":
    # Shapes consistent with the module:
    #   num_inputs = obs_space.shape[0] = 4
    #   layer_size = [32, 32], num_outputs = action_space.n = 4
    NUM_INPUTS, NUM_OUTPUTS = 4, 4
    LAYER_SIZE = [32, 32]

    key = jax.random.PRNGKey(0)
    key, kx_small, kx_big = jax.random.split(key, 3)
    params = init_params(key, NUM_INPUTS, LAYER_SIZE, NUM_OUTPUTS)
    prepared, f_out = prepare_params(params)  # one-time padding, hoisted

    # 1) Inference-size batch (single-block path).
    state_small = jax.random.normal(kx_small, (2, NUM_INPUTS), jnp.float32)
    logits_small = qdqn_classical_forward(
        state_small, prepared, num_outputs=f_out
    )
    logits_small = jax.block_until_ready(logits_small)
    np.testing.assert_allclose(
        np.asarray(logits_small),
        np.asarray(reference_forward(state_small, params)),
        rtol=1e-4,
        atol=1e-4,
    )

    # 2) Training-size batch (parallel batch-grid path).
    state_big = jax.random.normal(kx_big, (512, NUM_INPUTS), jnp.float32)
    logits_big = qdqn_classical_forward(state_big, prepared, num_outputs=f_out)
    logits_big = jax.block_until_ready(logits_big)
    np.testing.assert_allclose(
        np.asarray(logits_big),
        np.asarray(reference_forward(state_big, params)),
        rtol=1e-4,
        atol=1e-4,
    )

    print("KERNEL_OK")
</pallas_src>

<mosaic_0001>
module attributes {stable_mosaic.version = 11 : i64} {
  func.func @mlp_kernel(%arg0: memref<2x4xf32, #tpu.memory_space<vmem>>, %arg1: memref<4x32xf32, #tpu.memory_space<vmem>>, %arg2: memref<1x32xf32, #tpu.memory_space<vmem>>, %arg3: memref<32x32xf32, #tpu.memory_space<vmem>>, %arg4: memref<1x32xf32, #tpu.memory_space<vmem>>, %arg5: memref<32x128xf32, #tpu.memory_space<vmem>>, %arg6: memref<1x128xf32, #tpu.memory_space<vmem>>, %arg7: memref<2x128xf32, #tpu.memory_space<vmem>>) attributes {dimension_semantics = [], scalar_prefetch = 0 : i64, scratch_operands = 0 : i64, tpu.core_type = #tpu.core_type<tc>} {
    %c0 = arith.constant 0 : index
    %c0_0 = arith.constant 0 : index
    %0 = vector.load %arg0[%c0, %c0_0] : memref<2x4xf32, #tpu.memory_space<vmem>>, vector<2x4xf32>
    %c0_1 = arith.constant 0 : index
    %c0_2 = arith.constant 0 : index
    %1 = vector.load %arg1[%c0_1, %c0_2] : memref<4x32xf32, #tpu.memory_space<vmem>>, vector<4x32xf32>
    %cst = arith.constant dense<0.000000e+00> : vector<2x32xf32>
    %2 = tpu.matmul %0, %1, %cst {dimension_numbers = #tpu.dot_dimension_numbers<[1], [0], [0], [1], [0, 0, 1, 1], [], []>} : vector<2x4xf32>, vector<4x32xf32>, vector<2x32xf32> -> vector<2x32xf32>
    %c0_3 = arith.constant 0 : index
    %c0_4 = arith.constant 0 : index
    %3 = vector.load %arg2[%c0_3, %c0_4] : memref<1x32xf32, #tpu.memory_space<vmem>>, vector<1x32xf32>
    %4 = vector.broadcast %3 : vector<1x32xf32> to vector<2x32xf32>
    %5 = arith.addf %2, %4 : vector<2x32xf32>
    %cst_5 = arith.constant 0.000000e+00 : f32
    %6 = vector.broadcast %cst_5 : f32 to vector<2x32xf32>
    %7 = arith.maximumf %5, %6 : vector<2x32xf32>
    %c0_6 = arith.constant 0 : index
    %c0_7 = arith.constant 0 : index
    %8 = vector.load %arg3[%c0_6, %c0_7] : memref<32x32xf32, #tpu.memory_space<vmem>>, vector<32x32xf32>
    %cst_8 = arith.constant dense<0.000000e+00> : vector<2x32xf32>
    %9 = tpu.matmul %7, %8, %cst_8 {dimension_numbers = #tpu.dot_dimension_numbers<[1], [0], [0], [1], [0, 0, 1, 1], [], []>} : vector<2x32xf32>, vector<32x32xf32>, vector<2x32xf32> -> vector<2x32xf32>
    %c0_9 = arith.constant 0 : index
    %c0_10 = arith.constant 0 : index
    %10 = vector.load %arg4[%c0_9, %c0_10] : memref<1x32xf32, #tpu.memory_space<vmem>>, vector<1x32xf32>
    %11 = vector.broadcast %10 : vector<1x32xf32> to vector<2x32xf32>
    %12 = arith.addf %9, %11 : vector<2x32xf32>
    %cst_11 = arith.constant 0.000000e+00 : f32
    %13 = vector.broadcast %cst_11 : f32 to vector<2x32xf32>
    %14 = arith.maximumf %12, %13 : vector<2x32xf32>
    %c0_12 = arith.constant 0 : index
    %c0_13 = arith.constant 0 : index
    %15 = vector.load %arg5[%c0_12, %c0_13] : memref<32x128xf32, #tpu.memory_space<vmem>>, vector<32x128xf32>
    %cst_14 = arith.constant dense<0.000000e+00> : vector<2x128xf32>
    %16 = tpu.matmul %14, %15, %cst_14 {dimension_numbers = #tpu.dot_dimension_numbers<[1], [0], [0], [1], [0, 0, 1, 1], [], []>} : vector<2x32xf32>, vector<32x128xf32>, vector<2x128xf32> -> vector<2x128xf32>
    %c0_15 = arith.constant 0 : index
    %c0_16 = arith.constant 0 : index
    %17 = vector.load %arg6[%c0_15, %c0_16] : memref<1x128xf32, #tpu.memory_space<vmem>>, vector<1x128xf32>
    %18 = vector.broadcast %17 : vector<1x128xf32> to vector<2x128xf32>
    %19 = arith.addf %16, %18 : vector<2x128xf32>
    %c0_17 = arith.constant 0 : index
    %c0_18 = arith.constant 0 : index
    %20 = vector.load %arg7[%c0_17, %c0_18] : memref<2x128xf32, #tpu.memory_space<vmem>>, vector<2x128xf32>
    tpu.vector_store %arg7[%c0_17, %c0_18], %19 {strides = array<i32>} : memref<2x128xf32, #tpu.memory_space<vmem>>, vector<2x128xf32>,
    return
  }
}

</mosaic_0001>

<bundles_post_ra>
// kernel: qdqn_classical_forward.1
= control target key start
LH: loop header
LB: loop body
LE: loop exit
PB: predicated region body
PF: predicated region fallthrough
CT: control target
= control target key end

     0   :  { %12 = vsyncpa [#allocation3], 0  ;;  %s555_s0 = inlined_call_operand.hbm [shape: f32[2,4], index: 0, kind: input, shape index: {}]   ;;  %s556_s1 = inlined_call_operand.vmem [shape: f32[4,32], index: 1, kind: input, shape index: {}]   ;;  %s557_s2 = inlined_call_operand.vmem [shape: f32[1,32], index: 2, kind: input, shape index: {}]   ;;  %s558_s3 = inlined_call_operand.hbm [shape: f32[32,32], index: 3, kind: input, shape index: {}]   ;;  %s559_s4 = inlined_call_operand.vmem [shape: f32[1,32], index: 4, kind: input, shape index: {}]   ;;  %s560_s5 = inlined_call_operand.hbm [shape: f32[32,128], index: 5, kind: input, shape index: {}]   ;;  %s561_s6 = inlined_call_operand.vmem [shape: f32[1,128], index: 6, kind: input, shape index: {}]   ;;  %s562_s7 = inlined_call_operand.hbm [shape: f32[2,128], index: 7, kind: output, shape index: {}]  }
   0x1   :  { %13 = vsyncpa [#allocation6], 0 }
   0x2   :  { %14 = vsyncpa [#allocation4], 0  ;;  %s481_s24 = smov [#allocation5]  }
   0x3   :  { %s34_s25 = sshll.u32 %s481_s24, 4  ;;  %s35_s25 = int_to_ptr.vmem [resolvable:$true] %s34_s25 }
   0x4   :  { %s403_s26 = scalar_lea.vmem %s35_s25, 512  ;;  %p408_p1 = scmp.lt.s32.totalorder %s35_s25, %s35_s25 }
   0x5   :  { %p404_p0 = scmp.ne.s32.totalorder %s35_s25, %s403_s26  ;;  %p409_p2 = scmp.lt.s32.totalorder %s403_s26, %s403_s26 }
   0x7   :  { %p410_p3 = por %p409_p2, %p408_p1 }
   0x9   :  { %p411_p4 = pnand %p410_p3, %p404_p0 }
   0xb   :  { %414 = shalt.err (!%p411_p4)
}
   0xc   :  { %s482_s27 = smov 128   ;;  %s483_s28 = smov 8  }
   0xd   :  { %40 = dma.hbm_to_vmem [thread:$0]  %s558_s3, 512, %s35_s25, [#allocation6], %s482_s27, %s482_s27, %s483_s28  }
   0xe   :  { %s484_s8 = smov [#allocation2]   ;;  %s485_s10 = smov [#allocation7]  }
   0xf   :  { %s21_s9 = sshll.u32 %s484_s8, 4  ;;  %s48_s11 = sshll.u32 %s485_s10, 4  ;;  %s22_s9 = int_to_ptr.vmem [resolvable:$true] %s21_s9  ;;  %s49_s11 = int_to_ptr.vmem [resolvable:$true] %s48_s11 }
  0x10   :  { %s423_s12 = scalar_lea.vmem %s22_s9, 32  ;;  %p428_p6 = scmp.lt.s32.totalorder %s22_s9, %s22_s9 }
  0x11   :  { %p424_p5 = scmp.ne.s32.totalorder %s22_s9, %s423_s12  ;;  %p429_p7 = scmp.lt.s32.totalorder %s423_s12, %s423_s12 }
  0x13   :  { %p430_p8 = por %p429_p7, %p428_p6 }
  0x15   :  { %p431_p9 = pnand %p430_p8, %p424_p5 }
  0x17   :  { %434 = shalt.err (!%p431_p9)
}
  0x18   :  { %24 = dma.hbm_to_vmem [thread:$0]  %s555_s0, 32, %s22_s9, [#allocation3]  }
  0x19   :  { %s443_s15 = scalar_lea.vmem %s49_s11, 512  ;;  %p448_p11 = scmp.lt.s32.totalorder %s49_s11, %s49_s11 }
  0x1a   :  { %p444_p10 = scmp.ne.s32.totalorder %s49_s11, %s443_s15  ;;  %p449_p12 = scmp.lt.s32.totalorder %s443_s15, %s443_s15 }
  0x1c   :  { %p450_p13 = por %p449_p12, %p448_p11 }
  0x1e   :  { %p451_p0 = pnand %p450_p13, %p444_p10 }
  0x20   :  { %454 = shalt.err (!%p451_p0)
}
  0x21   :  { %54 = dma.hbm_to_vmem [thread:$0]  %s560_s5, 512, %s49_s11, [#allocation6], %s482_s27, %s482_s27, %s483_s28  }
  0x22   :  { %475 = dma.done.wait [#allocation3], 32  }
  0x23   :  { %476 = vsyncadd [#allocation3], 4294967264 }
  0x24   :  { %477 = dma.done.wait [#allocation6], 1024  }
  0x25   :  { %478 = vsyncadd [#allocation6], 4294966272  ;;  %v486_v0 = vmov 0.0   ;;  %vm487_vm0 = vmmov 0   ;;  %vm79_vm1 = vcmask 1043456   ;;  %vm75_vm2 = vcmask 31744  }
  0x26   :  { %360 = vmatprep.subr.mxu0 %v486_v0  ;;  %362 = vmatprep.mubr.msk.f32.mxu0 %vm487_vm0, %v486_v0  ;;  %v67_v1 = vld [vmem:[%s556_s1] sm:$0xf]  ;;  %v156_v4 = vld [vmem:[#allocation5 + $0x10] sm:$0xff]  ;;  %v155_v5 = vld [vmem:[#allocation5 + $0x8] sm:$0xff]  ;;  %vm165_vm3 = vcmask 261120   ;;  %s488_s21 = smov [#allocation8]  }
  0x27   :  { %365 = vmatprep.subr.mxu1 %v486_v0  ;;  %373 = vmatprep.mubr.msk.f32.mxu1 %vm487_vm0, %v486_v0  ;;  %v66_v2 = vld [vmem:[#allocation2] sm:$0x3]  ;;  %v154_v6 = vld [vmem:[#allocation5] sm:$0xff]  ;;  %v242_v13 = vld [vmem:[#allocation7 + $0x10] sm:$0xff]  ;;  %s331_s22 = sshll.u32 %s488_s21, 4  ;;  %s332_s22 = int_to_ptr.vmem [resolvable:$true] %s331_s22 }
  0x28   :  { %v157_v3 = vld [vmem:[#allocation5 + $0x18] sm:$0xff]  ;;  %361 = vmatpush3.msk.msra.mxu0 %vm79_vm1, %v67_v1  ;;  %v241_v14 = vld [vmem:[#allocation7 + $0x8] sm:$0xff]  ;;  %v240_v15 = vld [vmem:[#allocation7] sm:$0xff]  ;;  %s455_s23 = scalar_lea.vmem %s332_s22, 32  ;;  %p460_p2 = scmp.lt.s32.totalorder %s332_s22, %s332_s22 }
  0x29   :  { %366 = vmatpush3.msra.mxu1 %v157_v3  ;;  %363 = vmatmul.mubr.msk.f32.vlgmr.msra.gmra.mxu0 %vm75_vm2, %v66_v2  ;;  %v243_v7 = vld [vmem:[#allocation7 + $0x18] sm:$0xff]  ;;  %p456_p1 = scmp.ne.s32.totalorder %s332_s22, %s455_s23  ;;  %p461_p3 = scmp.lt.s32.totalorder %s455_s23, %s455_s23 }
  0x2a   :  { %367 = vmatprep.subr.mxu1 %v486_v0  ;;  %376 = vmatprep.subr.mxu0 %v486_v0  ;;  %v341_v8 = vld [vmem:[%s557_s2] ss:$0 sm:$0xff] }
  0x2b   :  { %384 = vmatprep.mubr.msk.f32.mxu0 %vm487_vm0, %v486_v0  ;;  %368 = vmatpush3.msra.mxu1 %v156_v4  ;;  %v344_v16 = vld [vmem:[%s559_s4] ss:$0 sm:$0xff]  ;;  %p462_p4 = por %p461_p3, %p460_p2 }
  0x2c   :  { %369 = vmatprep.subr.mxu1 %v486_v0  ;;  %377 = vmatpush3.msra.mxu0 %v243_v7  ;;  %v346_v21 = vld [vmem:[%s561_s6] ss:$0 sm:$0xff] }
  0x2d   :  { %370 = vmatpush3.msra.mxu1 %v155_v5  ;;  %378 = vmatprep.subr.mxu0 %v486_v0  ;;  %p463_p5 = pnand %p462_p4, %p456_p1 }
  0x2e   :  { %371 = vmatprep.subr.mxu1 %v486_v0  ;;  %379 = vmatpush3.msra.mxu0 %v242_v13 }
  0x2f   :  { %372 = vmatpush3.msra.mxu1 %v154_v6  ;;  %380 = vmatprep.subr.mxu0 %v486_v0 }
  0x30   :  { %381 = vmatpush3.msra.mxu0 %v241_v14 }
  0x31   :  { %382 = vmatprep.subr.mxu0 %v486_v0 }
  0x32   :  { %383 = vmatpush3.msra.mxu0 %v240_v15 }
  0xe9   :  { %v149_v9 = vpop.f32.mrf.mxu0 }
  0xea   :  { %v150_v10 = vadd.f32 %v341_v8, %v149_v9 }
  0xeb   :  { %v364_v11 = vpop.f32.mrf.mxu0 }
  0xec   :  { %v153_v12 = vmax.f32 %v150_v10, 0.0 }
  0xee   :  { %374 = vmatmul.mubr.msk.f32.vlgmr.msra.gmra.mxu1 %vm165_vm3, %v153_v12 }
 0x1ae   :  { %v235_v17 = vpop.f32.mrf.mxu1 }
 0x1af   :  { %v236_v18 = vadd.f32 %v344_v16, %v235_v17 }
 0x1b0   :  { %v375_v19 = vpop.f32.mrf.mxu1 }
 0x1b1   :  { %v239_v20 = vmax.f32 %v236_v18, 0.0 }
 0x1b3   :  { %385 = vmatmul.mubr.msk.f32.vlgmr.msra.gmra.mxu0 %vm165_vm3, %v239_v20 }
 0x273   :  { %v320_v22 = vpop.f32.mrf.mxu0 }
 0x274   :  { %v321_v23 = vadd.f32 %v346_v21, %v320_v22 }
 0x275   :  { %v386_v24 = vpop.f32.mrf.mxu0 }
 0x276   :  { %324 = vst [vmem:[#allocation8] sm:$0x3] %v321_v23 }
 0x277   :  { %466 = shalt.err (!%p463_p5)
}
 0x278   :  { %334 = dma.vmem_to_hbm [thread:$0]  %s332_s22, 32, %s562_s7, [#allocation4]  }
 0x279   :  { %479 = dma.done.wait [#allocation4], 32  }
 0x27a   :  { %480 = vsyncadd [#allocation4], 4294967264 }
 0x27b   :  { %338 = vsyncpa [#allocation3], 1 }
 0x27c   :  { %339 = vsyncpa [#allocation6], 1 }
 0x27d   :  { %340 = vsyncpa [#allocation4], 1 }

</bundles_post_ra>
